<compile_context>
chip_gen: v7x
topology: tpu7x:2x2x1
jax: 0.10.0
libtpu: 0.0.40
codegen_flags: <defaults>
</compile_context>

<pallas_src>
import functools

import jax
import jax.numpy as jnp
import numpy as np
from jax.experimental import pallas as pl
from jax.experimental.pallas import tpu as pltpu


# ----------------------------- Pallas kernel ------------------------------ #
def _cgc_kernel(Ep, Es, H, O, P, if_last,
                xf_ref, x1_ref, x2_ref,
                w1t1_ref, b1t1_ref, w1t2_ref, b1t2_ref, w1sh_ref, b1sh_ref,
                gwt1_ref, gbt1_ref, gwt2_ref, gbt2_ref, gwsh_ref, gbsh_ref,
                expt1_ref, expt2_ref, expsh_ref,
                w2pt1_ref, b2pt1_ref, w2pt2_ref, b2pt2_ref, w2psh_ref, b2psh_ref,
                out_ref, hc_ref):
    f32, bf16 = jnp.float32, jnp.bfloat16
    EpH, EsH = Ep * H, Es * H

    xf = xf_ref[...].astype(bf16)
    x1 = x1_ref[...].astype(bf16)
    x2 = x2_ref[...].astype(bf16)

    def dot_f32(a, b):
        return jnp.dot(a, b, preferred_element_type=f32)

    # --- fc1: one fused MXU call per expert group (all experts of a group use
    #     the same input, so their fc1 weights are concatenated along N). ----
    h1 = jnp.maximum(dot_f32(x1, w1t1_ref[...]) + b1t1_ref[...], 0.0)    # (TB, Ep*H)
    h2 = jnp.maximum(dot_f32(x2, w1t2_ref[...]) + b1t2_ref[...], 0.0)    # (TB, Ep*H)
    hsh = jnp.maximum(dot_f32(xf, w1sh_ref[...]) + b1sh_ref[...], 0.0)   # (TB, Es*H)

    # --- assemble canonical hidden layout [task1 | task2 | shared] in VMEM
    #     scratch; slots are 128-lane aligned and padding is kept at exact 0. -
    hc_ref[...] = jnp.zeros_like(hc_ref)
    hc_ref[:, 0:EpH] = h1
    hc_ref[:, P:P + EpH] = h2
    hc_ref[:, 2 * P:2 * P + EsH] = hsh
    hc = hc_ref[...]                                                     # (TB, 3P)

    def row_softmax(z):
        z = z - jnp.max(z, axis=1, keepdims=True)
        e = jnp.exp(z)
        return e * pl.reciprocal(jnp.sum(e, axis=1, keepdims=True), approx=True)

    # --- gates: Linear + Softmax(dim=1), f32 accumulate/elementwise. --------
    g1 = row_softmax(dot_f32(x1, gwt1_ref[...]) + gbt1_ref[...])         # (TB, Ep+Es)
    g2 = row_softmax(dot_f32(x2, gwt2_ref[...]) + gbt2_ref[...])         # (TB, Ep+Es)

    # --- broadcast each gate value over its expert's H hidden columns via a
    #     tiny dot with a 0/1 expansion matrix, then ONE fused fc2 MXU call
    #     per task, with weights pre-placed into that task's output lanes. ---
    ge1 = dot_f32(g1, expt1_ref[...])                                    # (TB, 3P)
    ge2 = dot_f32(g2, expt2_ref[...])
    out = dot_f32((hc * ge1).astype(bf16), w2pt1_ref[...]) + dot_f32(g1, b2pt1_ref[...])
    out = out + dot_f32((hc * ge2).astype(bf16), w2pt2_ref[...]) + dot_f32(g2, b2pt2_ref[...])

    if not if_last:
        gsh = row_softmax(dot_f32(xf, gwsh_ref[...]) + gbsh_ref[...])    # (TB, 2Ep+Es)
        gesh = dot_f32(gsh, expsh_ref[...])
        out = out + dot_f32((hc * gesh).astype(bf16), w2psh_ref[...]) \
                  + dot_f32(gsh, b2psh_ref[...])

    out_ref[...] = out                                                   # (TB, n_out*O)


# ------------------------- Host-side weight fusion ------------------------- #
def _prepare_fused(params, if_last, *, P, Wcat):
    Ep = params["num_specific_experts"]
    Es = params["num_shared_experts"]
    O = params["experts_out"]
    H = params["ws1"].shape[-1]
    n_out = 2 if if_last else 3
    f32, bf16 = jnp.float32, jnp.bfloat16

    def fuse_fc1(w1, b1):
        # (E, in, H) -> (in, E*H); (E, 1, H) -> (1, E*H)  (flattened biases)
        E, In, h = w1.shape
        w = jnp.transpose(w1, (1, 0, 2)).reshape(In, E * h)
        b = b1.reshape(1, E * h)
        return w.astype(bf16), b.astype(f32)

    w1_t1, b1_t1 = fuse_fc1(params["w11"], params["b11"])
    w1_t2, b1_t2 = fuse_fc1(params["w21"], params["b21"])
    w1_sh, b1_sh = fuse_fc1(params["ws1"], params["bs1"])

    hid_off = {"t1": 0, "t2": P, "sh": 2 * P}
    w2_src = {"t1": params["w12"], "t2": params["w22"], "sh": params["ws2"]}
    b2_src = {"t1": params["b12"], "t2": params["b22"], "sh": params["bs2"]}

    # Gate-column -> (hidden group, expert index) mapping, matching the PyTorch
    # torch.cat ordering of expert outputs for each gate.
    cols_t1 = [("t1", e) for e in range(Ep)] + [("sh", j) for j in range(Es)]
    cols_t2 = [("t2", e) for e in range(Ep)] + [("sh", j) for j in range(Es)]
    cols_sh = ([("t1", e) for e in range(Ep)] + [("t2", e) for e in range(Ep)]
               + [("sh", j) for j in range(Es)])

    def expand(cols):
        # 0/1 matrix: gate column c -> that expert's H hidden columns.
        m = jnp.zeros((len(cols), Wcat), f32)
        for c, (grp, e) in enumerate(cols):
            s = hid_off[grp] + e * H
            m = m.at[c, s:s + H].set(1.0)
        return m

    def placed_w2(cols, out_slot):
        # fc2 weights of all consumed experts, rows in canonical hidden layout,
        # columns placed into this task's block of the fused (B, n_out*O) out.
        m = jnp.zeros((Wcat, n_out * O), f32)
        for grp, e in cols:
            r = hid_off[grp] + e * H
            m = m.at[r:r + H, out_slot * O:(out_slot + 1) * O].set(w2_src[grp][e])
        return m.astype(bf16)

    def placed_b2(cols, out_slot):
        m = jnp.zeros((len(cols), n_out * O), f32)
        for c, (grp, e) in enumerate(cols):
            m = m.at[c, out_slot * O:(out_slot + 1) * O].set(b2_src[grp][e].reshape(O))
        return m

    slot = {"t1": 0, "t2": 1} if if_last else {"sh": 0, "t1": 1, "t2": 2}

    fused = dict(
        w1_t1=w1_t1, b1_t1=b1_t1, w1_t2=w1_t2, b1_t2=b1_t2,
        w1_sh=w1_sh, b1_sh=b1_sh,
        gw_t1=params["gw_t1"].astype(bf16), gb_t1=params["gb_t1"].astype(f32),
        gw_t2=params["gw_t2"].astype(bf16), gb_t2=params["gb_t2"].astype(f32),
        gw_sh=params["gw_sh"].astype(bf16), gb_sh=params["gb_sh"].astype(f32),
        exp_t1=expand(cols_t1), exp_t2=expand(cols_t2), exp_sh=expand(cols_sh),
        w2p_t1=placed_w2(cols_t1, slot["t1"]), b2p_t1=placed_b2(cols_t1, slot["t1"]),
        w2p_t2=placed_w2(cols_t2, slot["t2"]), b2p_t2=placed_b2(cols_t2, slot["t2"]),
    )
    if if_last:
        # Shared-gate path is statically skipped in the kernel; pass dummies.
        fused["w2p_sh"] = jnp.zeros((Wcat, n_out * O), bf16)
        fused["b2p_sh"] = jnp.zeros((len(cols_sh), n_out * O), f32)
    else:
        fused["w2p_sh"] = placed_w2(cols_sh, slot["sh"])
        fused["b2p_sh"] = placed_b2(cols_sh, slot["sh"])
    return fused


# ------------------------------ JAX wrapper -------------------------------- #
def cgc_ope_forward(params, x_full, x_task1, x_task2, *, if_last, batch_tile=256):
    """Runs the fused CGC_OPE forward pass in a single Pallas call."""
    Ep = params["num_specific_experts"]
    Es = params["num_shared_experts"]
    O = params["experts_out"]
    H = params["ws1"].shape[-1]
    B = x_full.shape[0]
    n_out = 2 if if_last else 3

    # Canonical hidden layout: 3 slots (task1 / task2 / shared), each padded to
    # a multiple of 128 lanes so the scratch assembly stores are lane-aligned.
    P = int(pl.cdiv(max(Ep, Es) * H, 128)) * 128
    Wcat = 3 * P

    fused = _prepare_fused(params, if_last, P=P, Wcat=Wcat)

    TB = B if B <= batch_tile else batch_tile          # batch tile (sublane dim)
    grid = (pl.cdiv(B, TB),)

    acts = (x_full, x_task1, x_task2)
    weights = (
        fused["w1_t1"], fused["b1_t1"], fused["w1_t2"], fused["b1_t2"],
        fused["w1_sh"], fused["b1_sh"],
        fused["gw_t1"], fused["gb_t1"], fused["gw_t2"], fused["gb_t2"],
        fused["gw_sh"], fused["gb_sh"],
        fused["exp_t1"], fused["exp_t2"], fused["exp_sh"],
        fused["w2p_t1"], fused["b2p_t1"], fused["w2p_t2"], fused["b2p_t2"],
        fused["w2p_sh"], fused["b2p_sh"],
    )

    in_specs = (
        [pl.BlockSpec((TB, a.shape[1]), lambda i: (i, 0)) for a in acts] +
        # weights/biases: constant block index -> VMEM-resident across tiles
        [pl.BlockSpec(w.shape, lambda i: (0, 0)) for w in weights]
    )

    out = pl.pallas_call(
        functools.partial(_cgc_kernel, Ep, Es, H, O, P, if_last),
        out_shape=jax.ShapeDtypeStruct((B, n_out * O), jnp.float32),
        grid=grid,
        in_specs=in_specs,
        out_specs=pl.BlockSpec((TB, n_out * O), lambda i: (i, 0)),
        scratch_shapes=[pltpu.VMEM((TB, Wcat), jnp.float32)],
        compiler_params=pltpu.CompilerParams(
            dimension_semantics=("parallel",)),
    )(*acts, *weights)

    if if_last:
        return [out[:, :O], out[:, O:2 * O]]
    return [out[:, :O], out[:, O:2 * O], out[:, 2 * O:3 * O]]


# --------------------------- Pure-JAX reference ---------------------------- #
def cgc_ope_reference(params, x_full, x_task1, x_task2, *, if_last):
    def expert(x, w1, b1, w2, b2):
        h = jnp.maximum(x @ w1 + b1[0], 0.0)
        return h @ w2 + b2[0]

    def softmax(z):
        return jax.nn.softmax(z, axis=1)

    Ep = params["num_specific_experts"]
    Es = params["num_shared_experts"]

    e_sh = jnp.stack([expert(x_full, params["ws1"][j], params["bs1"][j],
                             params["ws2"][j], params["bs2"][j]) for j in range(Es)])
    e_t1 = jnp.stack([expert(x_task1, params["w11"][i], params["b11"][i],
                             params["w12"][i], params["b12"][i]) for i in range(Ep)])
    e_t2 = jnp.stack([expert(x_task2, params["w21"][i], params["b21"][i],
                             params["w22"][i], params["b22"][i]) for i in range(Ep)])

    g_t1 = softmax(x_task1 @ params["gw_t1"] + params["gb_t1"][0])
    g_t2 = softmax(x_task2 @ params["gw_t2"] + params["gb_t2"][0])
    g_sh = softmax(x_full @ params["gw_sh"] + params["gb_sh"][0])

    out_t1 = jnp.einsum("abc,ba->bc", jnp.concatenate([e_t1, e_sh], 0), g_t1)
    out_t2 = jnp.einsum("abc,ba->bc", jnp.concatenate([e_t2, e_sh], 0), g_t2)
    out_sh = jnp.einsum("abc,ba->bc",
                        jnp.concatenate([e_t1, e_t2, e_sh], 0), g_sh)
    if if_last:
        return [out_t1, out_t2]
    return [out_sh, out_t1, out_t2]


# ------------------------------ Param init --------------------------------- #
def init_params(key, input_size_full, input_size_task1, input_size_task2,
                num_specific_experts, num_shared_experts,
                experts_out, experts_hidden):
    ks = jax.random.split(key, 24)
    s = 0.1

    def w(k, shape):
        return (s * jax.random.normal(k, shape)).astype(jnp.float32)

    Ep, Es = num_specific_experts, num_shared_experts
    H, O = experts_hidden, experts_out
    p = dict(
        num_specific_experts=Ep, num_shared_experts=Es, experts_out=O,
        # shared experts (operate on x_full)
        ws1=w(ks[0], (Es, input_size_full, H)), bs1=w(ks[1], (Es, 1, H)),
        ws2=w(ks[2], (Es, H, O)),               bs2=w(ks[3], (Es, 1, O)),
        # task1-specific experts
        w11=w(ks[4], (Ep, input_size_task1, H)), b11=w(ks[5], (Ep, 1, H)),
        w12=w(ks[6], (Ep, H, O)),                b12=w(ks[7], (Ep, 1, O)),
        # task2-specific experts
        w21=w(ks[8], (Ep, input_size_task2, H)), b21=w(ks[9], (Ep, 1, H)),
        w22=w(ks[10], (Ep, H, O)),               b22=w(ks[11], (Ep, 1, O)),
        # gates (Linear -> Softmax)
        gw_sh=w(ks[12], (input_size_full, 2 * Ep + Es)),  gb_sh=w(ks[13], (1, 2 * Ep + Es)),
        gw_t1=w(ks[14], (input_size_task1, Ep + Es)),     gb_t1=w(ks[15], (1, Ep + Es)),
        gw_t2=w(ks[16], (input_size_task2, Ep + Es)),     gb_t2=w(ks[17], (1, Ep + Es)),
    )
    return p


# --------------------------------- Main ------------------------------------ #
if __name__ == "__main__":
    B = 8
    input_size_full, input_size_task1, input_size_task2 = 24, 12, 16
    num_specific_experts, num_shared_experts = 2, 2
    experts_out, experts_hidden = 16, 32

    key = jax.random.PRNGKey(0)
    kp, kf, k1, k2 = jax.random.split(key, 4)

    params = init_params(kp, input_size_full, input_size_task1, input_size_task2,
                         num_specific_experts, num_shared_experts,
                         experts_out, experts_hidden)

    x_full = jax.random.normal(kf, (B, input_size_full), dtype=jnp.float32)
    x_task1 = jax.random.normal(k1, (B, input_size_task1), dtype=jnp.float32)
    x_task2 = jax.random.normal(k2, (B, input_size_task2), dtype=jnp.float32)

    # bf16 matmul inputs with f32 accumulation -> looser tolerance than pure f32.
    for if_last in (False, True):
        outs = cgc_ope_forward(params, x_full, x_task1, x_task2, if_last=if_last)
        outs = [jax.block_until_ready(o) for o in outs]
        refs = cgc_ope_reference(params, x_full, x_task1, x_task2, if_last=if_last)
        for o, r in zip(outs, refs):
            np.testing.assert_allclose(np.asarray(o), np.asarray(r),
                                       rtol=2e-2, atol=2e-2)

    print("KERNEL_OK")
</pallas_src>

<mosaic_0001>
module attributes {stable_mosaic.version = 11 : i64} {
  func.func @_cgc_kernel(%arg0: i32, %arg1: memref<8x24xf32, #tpu.memory_space<vmem>>, %arg2: memref<8x12xf32, #tpu.memory_space<vmem>>, %arg3: memref<8x16xf32, #tpu.memory_space<vmem>>, %arg4: memref<12x64xbf16, #tpu.memory_space<vmem>>, %arg5: memref<1x64xf32, #tpu.memory_space<vmem>>, %arg6: memref<16x64xbf16, #tpu.memory_space<vmem>>, %arg7: memref<1x64xf32, #tpu.memory_space<vmem>>, %arg8: memref<24x64xbf16, #tpu.memory_space<vmem>>, %arg9: memref<1x64xf32, #tpu.memory_space<vmem>>, %arg10: memref<12x4xbf16, #tpu.memory_space<vmem>>, %arg11: memref<1x4xf32, #tpu.memory_space<vmem>>, %arg12: memref<16x4xbf16, #tpu.memory_space<vmem>>, %arg13: memref<1x4xf32, #tpu.memory_space<vmem>>, %arg14: memref<24x6xbf16, #tpu.memory_space<vmem>>, %arg15: memref<1x6xf32, #tpu.memory_space<vmem>>, %arg16: memref<4x384xf32, #tpu.memory_space<vmem>>, %arg17: memref<4x384xf32, #tpu.memory_space<vmem>>, %arg18: memref<6x384xf32, #tpu.memory_space<vmem>>, %arg19: memref<384x48xbf16, #tpu.memory_space<vmem>>, %arg20: memref<4x48xf32, #tpu.memory_space<vmem>>, %arg21: memref<384x48xbf16, #tpu.memory_space<vmem>>, %arg22: memref<4x48xf32, #tpu.memory_space<vmem>>, %arg23: memref<384x48xbf16, #tpu.memory_space<vmem>>, %arg24: memref<6x48xf32, #tpu.memory_space<vmem>>, %arg25: memref<8x48xf32, #tpu.memory_space<vmem>>, %arg26: memref<8x384xf32, #tpu.memory_space<vmem>>) attributes {dimension_semantics = [#tpu.dimension_semantics<parallel>], iteration_bounds = array<i64: 1>, scalar_prefetch = 0 : i64, scratch_operands = 1 : i64, tpu.core_type = #tpu.core_type<tc>, window_params = [{transform_indices = @transform_0, window_bounds = array<i64: 8, 24>}, {transform_indices = @transform_1, window_bounds = array<i64: 8, 12>}, {transform_indices = @transform_2, window_bounds = array<i64: 8, 16>}, {pipeline_mode = #tpu.pipeline_mode<synchronous>, transform_indices = @transform_3, window_bounds = array<i64: 12, 64>}, {pipeline_mode = #tpu.pipeline_mode<synchronous>, transform_indices = @transform_4, window_bounds = array<i64: 1, 64>}, {pipeline_mode = #tpu.pipeline_mode<synchronous>, transform_indices = @transform_5, window_bounds = array<i64: 16, 64>}, {pipeline_mode = #tpu.pipeline_mode<synchronous>, transform_indices = @transform_6, window_bounds = array<i64: 1, 64>}, {pipeline_mode = #tpu.pipeline_mode<synchronous>, transform_indices = @transform_7, window_bounds = array<i64: 24, 64>}, {pipeline_mode = #tpu.pipeline_mode<synchronous>, transform_indices = @transform_8, window_bounds = array<i64: 1, 64>}, {pipeline_mode = #tpu.pipeline_mode<synchronous>, transform_indices = @transform_9, window_bounds = array<i64: 12, 4>}, {pipeline_mode = #tpu.pipeline_mode<synchronous>, transform_indices = @transform_10, window_bounds = array<i64: 1, 4>}, {pipeline_mode = #tpu.pipeline_mode<synchronous>, transform_indices = @transform_11, window_bounds = array<i64: 16, 4>}, {pipeline_mode = #tpu.pipeline_mode<synchronous>, transform_indices = @transform_12, window_bounds = array<i64: 1, 4>}, {pipeline_mode = #tpu.pipeline_mode<synchronous>, transform_indices = @transform_13, window_bounds = array<i64: 24, 6>}, {pipeline_mode = #tpu.pipeline_mode<synchronous>, transform_indices = @transform_14, window_bounds = array<i64: 1, 6>}, {pipeline_mode = #tpu.pipeline_mode<synchronous>, transform_indices = @transform_15, window_bounds = array<i64: 4, 384>}, {pipeline_mode = #tpu.pipeline_mode<synchronous>, transform_indices = @transform_16, window_bounds = array<i64: 4, 384>}, {pipeline_mode = #tpu.pipeline_mode<synchronous>, transform_indices = @transform_17, window_bounds = array<i64: 6, 384>}, {pipeline_mode = #tpu.pipeline_mode<synchronous>, transform_indices = @transform_18, window_bounds = array<i64: 384, 48>}, {pipeline_mode = #tpu.pipeline_mode<synchronous>, transform_indices = @transform_19, window_bounds = array<i64: 4, 48>}, {pipeline_mode = #tpu.pipeline_mode<synchronous>, transform_indices = @transform_20, window_bounds = array<i64: 384, 48>}, {pipeline_mode = #tpu.pipeline_mode<synchronous>, transform_indices = @transform_21, window_bounds = array<i64: 4, 48>}, {pipeline_mode = #tpu.pipeline_mode<synchronous>, transform_indices = @transform_22, window_bounds = array<i64: 384, 48>}, {pipeline_mode = #tpu.pipeline_mode<synchronous>, transform_indices = @transform_23, window_bounds = array<i64: 6, 48>}, {transform_indices = @transform_24, window_bounds = array<i64: 8, 48>}]} {
    %c0 = arith.constant 0 : index
    %c0_0 = arith.constant 0 : index
    %0 = vector.load %arg1[%c0, %c0_0] : memref<8x24xf32, #tpu.memory_space<vmem>>, vector<8x24xf32>
    %1 = arith.truncf %0 : vector<8x24xf32> to vector<8x24xbf16>
    %c0_1 = arith.constant 0 : index
    %c0_2 = arith.constant 0 : index
    %2 = vector.load %arg2[%c0_1, %c0_2] : memref<8x12xf32, #tpu.memory_space<vmem>>, vector<8x12xf32>
    %3 = arith.truncf %2 : vector<8x12xf32> to vector<8x12xbf16>
    %c0_3 = arith.constant 0 : index
    %c0_4 = arith.constant 0 : index
    %4 = vector.load %arg3[%c0_3, %c0_4] : memref<8x16xf32, #tpu.memory_space<vmem>>, vector<8x16xf32>
    %5 = arith.truncf %4 : vector<8x16xf32> to vector<8x16xbf16>
    %c0_5 = arith.constant 0 : index
    %c0_6 = arith.constant 0 : index
    %6 = vector.load %arg4[%c0_5, %c0_6] : memref<12x64xbf16, #tpu.memory_space<vmem>>, vector<12x64xbf16>
    %cst = arith.constant dense<0.000000e+00> : vector<8x64xf32>
    %7 = tpu.matmul %3, %6, %cst {dimension_numbers = #tpu.dot_dimension_numbers<[1], [0], [0], [1], [0, 0, 1, 1], [], []>} : vector<8x12xbf16>, vector<12x64xbf16>, vector<8x64xf32> -> vector<8x64xf32>
    %c0_7 = arith.constant 0 : index
    %c0_8 = arith.constant 0 : index
    %8 = vector.load %arg5[%c0_7, %c0_8] : memref<1x64xf32, #tpu.memory_space<vmem>>, vector<1x64xf32>
    %9 = vector.broadcast %8 : vector<1x64xf32> to vector<8x64xf32>
    %10 = arith.addf %7, %9 : vector<8x64xf32>
    %cst_9 = arith.constant 0.000000e+00 : f32
    %11 = vector.broadcast %cst_9 : f32 to vector<8x64xf32>
    %12 = arith.maximumf %10, %11 : vector<8x64xf32>
    %c0_10 = arith.constant 0 : index
    %c0_11 = arith.constant 0 : index
    %13 = vector.load %arg6[%c0_10, %c0_11] : memref<16x64xbf16, #tpu.memory_space<vmem>>, vector<16x64xbf16>
    %cst_12 = arith.constant dense<0.000000e+00> : vector<8x64xf32>
    %14 = tpu.matmul %5, %13, %cst_12 {dimension_numbers = #tpu.dot_dimension_numbers<[1], [0], [0], [1], [0, 0, 1, 1], [], []>} : vector<8x16xbf16>, vector<16x64xbf16>, vector<8x64xf32> -> vector<8x64xf32>
    %c0_13 = arith.constant 0 : index
    %c0_14 = arith.constant 0 : index
    %15 = vector.load %arg7[%c0_13, %c0_14] : memref<1x64xf32, #tpu.memory_space<vmem>>, vector<1x64xf32>
    %16 = vector.broadcast %15 : vector<1x64xf32> to vector<8x64xf32>
    %17 = arith.addf %14, %16 : vector<8x64xf32>
    %cst_15 = arith.constant 0.000000e+00 : f32
    %18 = vector.broadcast %cst_15 : f32 to vector<8x64xf32>
    %19 = arith.maximumf %17, %18 : vector<8x64xf32>
    %c0_16 = arith.constant 0 : index
    %c0_17 = arith.constant 0 : index
    %20 = vector.load %arg8[%c0_16, %c0_17] : memref<24x64xbf16, #tpu.memory_space<vmem>>, vector<24x64xbf16>
    %cst_18 = arith.constant dense<0.000000e+00> : vector<8x64xf32>
    %21 = tpu.matmul %1, %20, %cst_18 {dimension_numbers = #tpu.dot_dimension_numbers<[1], [0], [0], [1], [0, 0, 1, 1], [], []>} : vector<8x24xbf16>, vector<24x64xbf16>, vector<8x64xf32> -> vector<8x64xf32>
    %c0_19 = arith.constant 0 : index
    %c0_20 = arith.constant 0 : index
    %22 = vector.load %arg9[%c0_19, %c0_20] : memref<1x64xf32, #tpu.memory_space<vmem>>, vector<1x64xf32>
    %23 = vector.broadcast %22 : vector<1x64xf32> to vector<8x64xf32>
    %24 = arith.addf %21, %23 : vector<8x64xf32>
    %cst_21 = arith.constant 0.000000e+00 : f32
    %25 = vector.broadcast %cst_21 : f32 to vector<8x64xf32>
    %26 = arith.maximumf %24, %25 : vector<8x64xf32>
    %cst_22 = arith.constant 0.000000e+00 : f32
    %27 = vector.broadcast %cst_22 : f32 to vector<8x384xf32>
    %c0_23 = arith.constant 0 : index
    %c0_24 = arith.constant 0 : index
    %28 = vector.load %arg26[%c0_23, %c0_24] : memref<8x384xf32, #tpu.memory_space<vmem>>, vector<8x384xf32>
    tpu.vector_store %arg26[%c0_23, %c0_24], %27 {strides = array<i32>} : memref<8x384xf32, #tpu.memory_space<vmem>>, vector<8x384xf32>,
    %c0_25 = arith.constant 0 : index
    %c0_26 = arith.constant 0 : index
    %29 = vector.load %arg26[%c0_25, %c0_26] : memref<8x384xf32, #tpu.memory_space<vmem>>, vector<8x64xf32>
    tpu.vector_store %arg26[%c0_25, %c0_26], %12 {strides = array<i32>} : memref<8x384xf32, #tpu.memory_space<vmem>>, vector<8x64xf32>,
    %c0_27 = arith.constant 0 : index
    %c128 = arith.constant 128 : index
    %30 = vector.load %arg26[%c0_27, %c128] : memref<8x384xf32, #tpu.memory_space<vmem>>, vector<8x64xf32>
    tpu.vector_store %arg26[%c0_27, %c128], %19 {strides = array<i32>} : memref<8x384xf32, #tpu.memory_space<vmem>>, vector<8x64xf32>,
    %c0_28 = arith.constant 0 : index
    %c256 = arith.constant 256 : index
    %31 = vector.load %arg26[%c0_28, %c256] : memref<8x384xf32, #tpu.memory_space<vmem>>, vector<8x64xf32>
    tpu.vector_store %arg26[%c0_28, %c256], %26 {strides = array<i32>} : memref<8x384xf32, #tpu.memory_space<vmem>>, vector<8x64xf32>,
    %c0_29 = arith.constant 0 : index
    %c0_30 = arith.constant 0 : index
    %32 = vector.load %arg26[%c0_29, %c0_30] : memref<8x384xf32, #tpu.memory_space<vmem>>, vector<8x384xf32>
    %c0_31 = arith.constant 0 : index
    %c0_32 = arith.constant 0 : index
    %33 = vector.load %arg10[%c0_31, %c0_32] : memref<12x4xbf16, #tpu.memory_space<vmem>>, vector<12x4xbf16>
    %cst_33 = arith.constant dense<0.000000e+00> : vector<8x4xf32>
    %34 = tpu.matmul %3, %33, %cst_33 {dimension_numbers = #tpu.dot_dimension_numbers<[1], [0], [0], [1], [0, 0, 1, 1], [], []>} : vector<8x12xbf16>, vector<12x4xbf16>, vector<8x4xf32> -> vector<8x4xf32>
    %c0_34 = arith.constant 0 : index
    %c0_35 = arith.constant 0 : index
    %35 = vector.load %arg11[%c0_34, %c0_35] : memref<1x4xf32, #tpu.memory_space<vmem>>, vector<1x4xf32>
    %36 = vector.broadcast %35 : vector<1x4xf32> to vector<8x4xf32>
    %37 = arith.addf %34, %36 : vector<8x4xf32>
    %cst_36 = arith.constant dense<0xFF800000> : vector<8xf32>
    %38 = vector.multi_reduction <maximumf>, %37, %cst_36 [1] : vector<8x4xf32> to vector<8xf32>
    %39 = vector.shape_cast %38 : vector<8xf32> to vector<8x1xf32>
    %40 = vector.broadcast %39 : vector<8x1xf32> to vector<8x4xf32>
    %41 = arith.subf %37, %40 : vector<8x4xf32>
    %42 = math.exp %41 : vector<8x4xf32>
    %cst_37 = arith.constant dense<0.000000e+00> : vector<8xf32>
    %43 = vector.multi_reduction <add>, %42, %cst_37 [1] : vector<8x4xf32> to vector<8xf32>
    %44 = vector.shape_cast %43 : vector<8xf32> to vector<8x1xf32>
    %45 = tpu.reciprocal %44 {approx = true} : vector<8x1xf32> -> vector<8x1xf32>
    %46 = vector.broadcast %45 : vector<8x1xf32> to vector<8x4xf32>
    %47 = arith.mulf %42, %46 : vector<8x4xf32>
    %c0_38 = arith.constant 0 : index
    %c0_39 = arith.constant 0 : index
    %48 = vector.load %arg12[%c0_38, %c0_39] : memref<16x4xbf16, #tpu.memory_space<vmem>>, vector<16x4xbf16>
    %cst_40 = arith.constant dense<0.000000e+00> : vector<8x4xf32>
    %49 = tpu.matmul %5, %48, %cst_40 {dimension_numbers = #tpu.dot_dimension_numbers<[1], [0], [0], [1], [0, 0, 1, 1], [], []>} : vector<8x16xbf16>, vector<16x4xbf16>, vector<8x4xf32> -> vector<8x4xf32>
    %c0_41 = arith.constant 0 : index
    %c0_42 = arith.constant 0 : index
    %50 = vector.load %arg13[%c0_41, %c0_42] : memref<1x4xf32, #tpu.memory_space<vmem>>, vector<1x4xf32>
    %51 = vector.broadcast %50 : vector<1x4xf32> to vector<8x4xf32>
    %52 = arith.addf %49, %51 : vector<8x4xf32>
    %cst_43 = arith.constant dense<0xFF800000> : vector<8xf32>
    %53 = vector.multi_reduction <maximumf>, %52, %cst_43 [1] : vector<8x4xf32> to vector<8xf32>
    %54 = vector.shape_cast %53 : vector<8xf32> to vector<8x1xf32>
    %55 = vector.broadcast %54 : vector<8x1xf32> to vector<8x4xf32>
    %56 = arith.subf %52, %55 : vector<8x4xf32>
    %57 = math.exp %56 : vector<8x4xf32>
    %cst_44 = arith.constant dense<0.000000e+00> : vector<8xf32>
    %58 = vector.multi_reduction <add>, %57, %cst_44 [1] : vector<8x4xf32> to vector<8xf32>
    %59 = vector.shape_cast %58 : vector<8xf32> to vector<8x1xf32>
    %60 = tpu.reciprocal %59 {approx = true} : vector<8x1xf32> -> vector<8x1xf32>
    %61 = vector.broadcast %60 : vector<8x1xf32> to vector<8x4xf32>
    %62 = arith.mulf %57, %61 : vector<8x4xf32>
    %c0_45 = arith.constant 0 : index
    %c0_46 = arith.constant 0 : index
    %63 = vector.load %arg16[%c0_45, %c0_46] : memref<4x384xf32, #tpu.memory_space<vmem>>, vector<4x384xf32>
    %cst_47 = arith.constant dense<0.000000e+00> : vector<8x384xf32>
    %64 = tpu.matmul %47, %63, %cst_47 {dimension_numbers = #tpu.dot_dimension_numbers<[1], [0], [0], [1], [0, 0, 1, 1], [], []>} : vector<8x4xf32>, vector<4x384xf32>, vector<8x384xf32> -> vector<8x384xf32>
    %c0_48 = arith.constant 0 : index
    %c0_49 = arith.constant 0 : index
    %65 = vector.load %arg17[%c0_48, %c0_49] : memref<4x384xf32, #tpu.memory_space<vmem>>, vector<4x384xf32>
    %cst_50 = arith.constant dense<0.000000e+00> : vector<8x384xf32>
    %66 = tpu.matmul %62, %65, %cst_50 {dimension_numbers = #tpu.dot_dimension_numbers<[1], [0], [0], [1], [0, 0, 1, 1], [], []>} : vector<8x4xf32>, vector<4x384xf32>, vector<8x384xf32> -> vector<8x384xf32>
    %67 = arith.mulf %32, %64 : vector<8x384xf32>
    %68 = arith.truncf %67 : vector<8x384xf32> to vector<8x384xbf16>
    %c0_51 = arith.constant 0 : index
    %c0_52 = arith.constant 0 : index
    %69 = vector.load %arg19[%c0_51, %c0_52] : memref<384x48xbf16, #tpu.memory_space<vmem>>, vector<384x48xbf16>
    %cst_53 = arith.constant dense<0.000000e+00> : vector<8x48xf32>
    %70 = tpu.matmul %68, %69, %cst_53 {dimension_numbers = #tpu.dot_dimension_numbers<[1], [0], [0], [1], [0, 0, 1, 1], [], []>} : vector<8x384xbf16>, vector<384x48xbf16>, vector<8x48xf32> -> vector<8x48xf32>
    %c0_54 = arith.constant 0 : index
    %c0_55 = arith.constant 0 : index
    %71 = vector.load %arg20[%c0_54, %c0_55] : memref<4x48xf32, #tpu.memory_space<vmem>>, vector<4x48xf32>
    %cst_56 = arith.constant dense<0.000000e+00> : vector<8x48xf32>
    %72 = tpu.matmul %47, %71, %cst_56 {dimension_numbers = #tpu.dot_dimension_numbers<[1], [0], [0], [1], [0, 0, 1, 1], [], []>} : vector<8x4xf32>, vector<4x48xf32>, vector<8x48xf32> -> vector<8x48xf32>
    %73 = arith.addf %70, %72 : vector<8x48xf32>
    %74 = arith.mulf %32, %66 : vector<8x384xf32>
    %75 = arith.truncf %74 : vector<8x384xf32> to vector<8x384xbf16>
    %c0_57 = arith.constant 0 : index
    %c0_58 = arith.constant 0 : index
    %76 = vector.load %arg21[%c0_57, %c0_58] : memref<384x48xbf16, #tpu.memory_space<vmem>>, vector<384x48xbf16>
    %cst_59 = arith.constant dense<0.000000e+00> : vector<8x48xf32>
    %77 = tpu.matmul %75, %76, %cst_59 {dimension_numbers = #tpu.dot_dimension_numbers<[1], [0], [0], [1], [0, 0, 1, 1], [], []>} : vector<8x384xbf16>, vector<384x48xbf16>, vector<8x48xf32> -> vector<8x48xf32>
    %78 = arith.addf %73, %77 : vector<8x48xf32>
    %c0_60 = arith.constant 0 : index
    %c0_61 = arith.constant 0 : index
    %79 = vector.load %arg22[%c0_60, %c0_61] : memref<4x48xf32, #tpu.memory_space<vmem>>, vector<4x48xf32>
    %cst_62 = arith.constant dense<0.000000e+00> : vector<8x48xf32>
    %80 = tpu.matmul %62, %79, %cst_62 {dimension_numbers = #tpu.dot_dimension_numbers<[1], [0], [0], [1], [0, 0, 1, 1], [], []>} : vector<8x4xf32>, vector<4x48xf32>, vector<8x48xf32> -> vector<8x48xf32>
    %81 = arith.addf %78, %80 : vector<8x48xf32>
    %c0_63 = arith.constant 0 : index
    %c0_64 = arith.constant 0 : index
    %82 = vector.load %arg14[%c0_63, %c0_64] : memref<24x6xbf16, #tpu.memory_space<vmem>>, vector<24x6xbf16>
    %cst_65 = arith.constant dense<0.000000e+00> : vector<8x6xf32>
    %83 = tpu.matmul %1, %82, %cst_65 {dimension_numbers = #tpu.dot_dimension_numbers<[1], [0], [0], [1], [0, 0, 1, 1], [], []>} : vector<8x24xbf16>, vector<24x6xbf16>, vector<8x6xf32> -> vector<8x6xf32>
    %c0_66 = arith.constant 0 : index
    %c0_67 = arith.constant 0 : index
    %84 = vector.load %arg15[%c0_66, %c0_67] : memref<1x6xf32, #tpu.memory_space<vmem>>, vector<1x6xf32>
    %85 = vector.broadcast %84 : vector<1x6xf32> to vector<8x6xf32>
    %86 = arith.addf %83, %85 : vector<8x6xf32>
    %cst_68 = arith.constant dense<0xFF800000> : vector<8xf32>
    %87 = vector.multi_reduction <maximumf>, %86, %cst_68 [1] : vector<8x6xf32> to vector<8xf32>
    %88 = vector.shape_cast %87 : vector<8xf32> to vector<8x1xf32>
    %89 = vector.broadcast %88 : vector<8x1xf32> to vector<8x6xf32>
    %90 = arith.subf %86, %89 : vector<8x6xf32>
    %91 = math.exp %90 : vector<8x6xf32>
    %cst_69 = arith.constant dense<0.000000e+00> : vector<8xf32>
    %92 = vector.multi_reduction <add>, %91, %cst_69 [1] : vector<8x6xf32> to vector<8xf32>
    %93 = vector.shape_cast %92 : vector<8xf32> to vector<8x1xf32>
    %94 = tpu.reciprocal %93 {approx = true} : vector<8x1xf32> -> vector<8x1xf32>
    %95 = vector.broadcast %94 : vector<8x1xf32> to vector<8x6xf32>
    %96 = arith.mulf %91, %95 : vector<8x6xf32>
    %c0_70 = arith.constant 0 : index
    %c0_71 = arith.constant 0 : index
    %97 = vector.load %arg18[%c0_70, %c0_71] : memref<6x384xf32, #tpu.memory_space<vmem>>, vector<6x384xf32>
    %cst_72 = arith.constant dense<0.000000e+00> : vector<8x384xf32>
    %98 = tpu.matmul %96, %97, %cst_72 {dimension_numbers = #tpu.dot_dimension_numbers<[1], [0], [0], [1], [0, 0, 1, 1], [], []>} : vector<8x6xf32>, vector<6x384xf32>, vector<8x384xf32> -> vector<8x384xf32>
    %99 = arith.mulf %32, %98 : vector<8x384xf32>
    %100 = arith.truncf %99 : vector<8x384xf32> to vector<8x384xbf16>
    %c0_73 = arith.constant 0 : index
    %c0_74 = arith.constant 0 : index
    %101 = vector.load %arg23[%c0_73, %c0_74] : memref<384x48xbf16, #tpu.memory_space<vmem>>, vector<384x48xbf16>
    %cst_75 = arith.constant dense<0.000000e+00> : vector<8x48xf32>
    %102 = tpu.matmul %100, %101, %cst_75 {dimension_numbers = #tpu.dot_dimension_numbers<[1], [0], [0], [1], [0, 0, 1, 1], [], []>} : vector<8x384xbf16>, vector<384x48xbf16>, vector<8x48xf32> -> vector<8x48xf32>
    %103 = arith.addf %81, %102 : vector<8x48xf32>
    %c0_76 = arith.constant 0 : index
    %c0_77 = arith.constant 0 : index
    %104 = vector.load %arg24[%c0_76, %c0_77] : memref<6x48xf32, #tpu.memory_space<vmem>>, vector<6x48xf32>
    %cst_78 = arith.constant dense<0.000000e+00> : vector<8x48xf32>
    %105 = tpu.matmul %96, %104, %cst_78 {dimension_numbers = #tpu.dot_dimension_numbers<[1], [0], [0], [1], [0, 0, 1, 1], [], []>} : vector<8x6xf32>, vector<6x48xf32>, vector<8x48xf32> -> vector<8x48xf32>
    %106 = arith.addf %103, %105 : vector<8x48xf32>
    %c0_79 = arith.constant 0 : index
    %c0_80 = arith.constant 0 : index
    %107 = vector.load %arg25[%c0_79, %c0_80] : memref<8x48xf32, #tpu.memory_space<vmem>>, vector<8x48xf32>
    tpu.vector_store %arg25[%c0_79, %c0_80], %106 {strides = array<i32>} : memref<8x48xf32, #tpu.memory_space<vmem>>, vector<8x48xf32>,
    return
  }
  func.func @transform_0(%arg0: i32) -> (i32, i32) {
    %c0_i32 = arith.constant 0 : i32
    %c0_i32_0 = arith.constant 0 : i32
    return %arg0, %c0_i32 : i32, i32
  }
  func.func @transform_1(%arg0: i32) -> (i32, i32) {
    %c0_i32 = arith.constant 0 : i32
    %c0_i32_0 = arith.constant 0 : i32
    return %arg0, %c0_i32 : i32, i32
  }
  func.func @transform_2(%arg0: i32) -> (i32, i32) {
    %c0_i32 = arith.constant 0 : i32
    %c0_i32_0 = arith.constant 0 : i32
    return %arg0, %c0_i32 : i32, i32
  }
  func.func @transform_3(%arg0: i32) -> (i32, i32) {
    %c0_i32 = arith.constant 0 : i32
    %c0_i32_0 = arith.constant 0 : i32
    %c0_i32_1 = arith.constant 0 : i32
    return %c0_i32, %c0_i32_0 : i32, i32
  }
  func.func @transform_4(%arg0: i32) -> (i32, i32) {
    %c0_i32 = arith.constant 0 : i32
    %c0_i32_0 = arith.constant 0 : i32
    %c0_i32_1 = arith.constant 0 : i32
    return %c0_i32, %c0_i32_0 : i32, i32
  }
  func.func @transform_5(%arg0: i32) -> (i32, i32) {
    %c0_i32 = arith.constant 0 : i32
    %c0_i32_0 = arith.constant 0 : i32
    %c0_i32_1 = arith.constant 0 : i32
    return %c0_i32, %c0_i32_0 : i32, i32
  }
  func.func @transform_6(%arg0: i32) -> (i32, i32) {
    %c0_i32 = arith.constant 0 : i32
    %c0_i32_0 = arith.constant 0 : i32
    %c0_i32_1 = arith.constant 0 : i32
    return %c0_i32, %c0_i32_0 : i32, i32
  }
  func.func @transform_7(%arg0: i32) -> (i32, i32) {
    %c0_i32 = arith.constant 0 : i32
    %c0_i32_0 = arith.constant 0 : i32
    %c0_i32_1 = arith.constant 0 : i32
    return %c0_i32, %c0_i32_0 : i32, i32
  }
  func.func @transform_8(%arg0: i32) -> (i32, i32) {
    %c0_i32 = arith.constant 0 : i32
    %c0_i32_0 = arith.constant 0 : i32
    %c0_i32_1 = arith.constant 0 : i32
    return %c0_i32, %c0_i32_0 : i32, i32
  }
  func.func @transform_9(%arg0: i32) -> (i32, i32) {
    %c0_i32 = arith.constant 0 : i32
    %c0_i32_0 = arith.constant 0 : i32
    %c0_i32_1 = arith.constant 0 : i32
    return %c0_i32, %c0_i32_0 : i32, i32
  }
  func.func @transform_10(%arg0: i32) -> (i32, i32) {
    %c0_i32 = arith.constant 0 : i32
    %c0_i32_0 = arith.constant 0 : i32
    %c0_i32_1 = arith.constant 0 : i32
    return %c0_i32, %c0_i32_0 : i32, i32
  }
  func.func @transform_11(%arg0: i32) -> (i32, i32) {
    %c0_i32 = arith.constant 0 : i32
    %c0_i32_0 = arith.constant 0 : i32
    %c0_i32_1 = arith.constant 0 : i32
    return %c0_i32, %c0_i32_0 : i32, i32
  }
  func.func @transform_12(%arg0: i32) -> (i32, i32) {
    %c0_i32 = arith.constant 0 : i32
    %c0_i32_0 = arith.constant 0 : i32
    %c0_i32_1 = arith.constant 0 : i32
    return %c0_i32, %c0_i32_0 : i32, i32
  }
  func.func @transform_13(%arg0: i32) -> (i32, i32) {
    %c0_i32 = arith.constant 0 : i32
    %c0_i32_0 = arith.constant 0 : i32
    %c0_i32_1 = arith.constant 0 : i32
    return %c0_i32, %c0_i32_0 : i32, i32
  }
  func.func @transform_14(%arg0: i32) -> (i32, i32) {
    %c0_i32 = arith.constant 0 : i32
    %c0_i32_0 = arith.constant 0 : i32
    %c0_i32_1 = arith.constant 0 : i32
    return %c0_i32, %c0_i32_0 : i32, i32
  }
  func.func @transform_15(%arg0: i32) -> (i32, i32) {
    %c0_i32 = arith.constant 0 : i32
    %c0_i32_0 = arith.constant 0 : i32
    %c0_i32_1 = arith.constant 0 : i32
    return %c0_i32, %c0_i32_0 : i32, i32
  }
  func.func @transform_16(%arg0: i32) -> (i32, i32) {
    %c0_i32 = arith.constant 0 : i32
    %c0_i32_0 = arith.constant 0 : i32
    %c0_i32_1 = arith.constant 0 : i32
    return %c0_i32, %c0_i32_0 : i32, i32
  }
  func.func @transform_17(%arg0: i32) -> (i32, i32) {
    %c0_i32 = arith.constant 0 : i32
    %c0_i32_0 = arith.constant 0 : i32
    %c0_i32_1 = arith.constant 0 : i32
    return %c0_i32, %c0_i32_0 : i32, i32
  }
  func.func @transform_18(%arg0: i32) -> (i32, i32) {
    %c0_i32 = arith.constant 0 : i32
    %c0_i32_0 = arith.constant 0 : i32
    %c0_i32_1 = arith.constant 0 : i32
    return %c0_i32, %c0_i32_0 : i32, i32
  }
  func.func @transform_19(%arg0: i32) -> (i32, i32) {
    %c0_i32 = arith.constant 0 : i32
    %c0_i32_0 = arith.constant 0 : i32
    %c0_i32_1 = arith.constant 0 : i32
    return %c0_i32, %c0_i32_0 : i32, i32
  }
  func.func @transform_20(%arg0: i32) -> (i32, i32) {
    %c0_i32 = arith.constant 0 : i32
    %c0_i32_0 = arith.constant 0 : i32
    %c0_i32_1 = arith.constant 0 : i32
    return %c0_i32, %c0_i32_0 : i32, i32
  }
  func.func @transform_21(%arg0: i32) -> (i32, i32) {
    %c0_i32 = arith.constant 0 : i32
    %c0_i32_0 = arith.constant 0 : i32
    %c0_i32_1 = arith.constant 0 : i32
    return %c0_i32, %c0_i32_0 : i32, i32
  }
  func.func @transform_22(%arg0: i32) -> (i32, i32) {
    %c0_i32 = arith.constant 0 : i32
    %c0_i32_0 = arith.constant 0 : i32
    %c0_i32_1 = arith.constant 0 : i32
    return %c0_i32, %c0_i32_0 : i32, i32
  }
  func.func @transform_23(%arg0: i32) -> (i32, i32) {
    %c0_i32 = arith.constant 0 : i32
    %c0_i32_0 = arith.constant 0 : i32
    %c0_i32_1 = arith.constant 0 : i32
    return %c0_i32, %c0_i32_0 : i32, i32
  }
  func.func @transform_24(%arg0: i32) -> (i32, i32) {
    %c0_i32 = arith.constant 0 : i32
    %c0_i32_0 = arith.constant 0 : i32
    return %arg0, %c0_i32 : i32, i32
  }
}

</mosaic_0001>

<bundles_post_ra>
// kernel: tpu_custom_call.1
= control target key start
LH: loop header
LB: loop body
LE: loop exit
PB: predicated region body
PF: predicated region fallthrough
CT: control target
= control target key end

     0   :  { %s3101_s0 = inlined_call_operand.vmem [shape: f32[8,24], index: 0, kind: input, shape index: {}]   ;;  %s3102_s1 = inlined_call_operand.vmem [shape: f32[8,12], index: 1, kind: input, shape index: {}]   ;;  %s3103_s2 = inlined_call_operand.vmem [shape: f32[8,16], index: 2, kind: input, shape index: {}]   ;;  %s3104_s3 = inlined_call_operand.vmem [shape: bf16[12,64], index: 3, kind: input, shape index: {}]   ;;  %s3105_s4 = inlined_call_operand.vmem [shape: f32[1,64], index: 4, kind: input, shape index: {}]   ;;  %s3106_s5 = inlined_call_operand.vmem [shape: bf16[16,64], index: 5, kind: input, shape index: {}]   ;;  %s3107_s6 = inlined_call_operand.vmem [shape: f32[1,64], index: 6, kind: input, shape index: {}]   ;;  %s3108_s7 = inlined_call_operand.vmem [shape: bf16[24,64], index: 7, kind: input, shape index: {}]   ;;  %s3109_s8 = inlined_call_operand.vmem [shape: f32[1,64], index: 8, kind: input, shape index: {}]   ;;  %s3110_s9 = inlined_call_operand.vmem [shape: bf16[12,4], index: 9, kind: input, shape index: {}]   ;;  %s3111_s10 = inlined_call_operand.vmem [shape: f32[1,4], index: 10, kind: input, shape index: {}]   ;;  %s3112_s11 = inlined_call_operand.vmem [shape: bf16[16,4], index: 11, kind: input, shape index: {}]   ;;  %s3113_s12 = inlined_call_operand.vmem [shape: f32[1,4], index: 12, kind: input, shape index: {}]   ;;  %s3114_s13 = inlined_call_operand.vmem [shape: bf16[24,6], index: 13, kind: input, shape index: {}]   ;;  %s3115_s14 = inlined_call_operand.vmem [shape: f32[1,6], index: 14, kind: input, shape index: {}]   ;;  %s3116_s15 = inlined_call_operand.vmem [shape: f32[4,384], index: 15, kind: input, shape index: {}]   ;;  %s3117_s16 = inlined_call_operand.vmem [shape: f32[4,384], index: 16, kind: input, shape index: {}]   ;;  %s3118_s17 = inlined_call_operand.vmem [shape: f32[6,384], index: 17, kind: input, shape index: {}]   ;;  %s3119_s18 = inlined_call_operand.vmem [shape: bf16[384,48], index: 18, kind: input, shape index: {}]   ;;  %s3120_s19 = inlined_call_operand.vmem [shape: f32[4,48], index: 19, kind: input, shape index: {}]   ;;  %s3121_s20 = inlined_call_operand.vmem [shape: bf16[384,48], index: 20, kind: input, shape index: {}]   ;;  %s3122_s21 = inlined_call_operand.vmem [shape: f32[4,48], index: 21, kind: input, shape index: {}]   ;;  %s3123_s22 = inlined_call_operand.vmem [shape: bf16[384,48], index: 22, kind: input, shape index: {}]   ;;  %s3124_s23 = inlined_call_operand.vmem [shape: f32[6,48], index: 23, kind: input, shape index: {}]   ;;  %s3125_s24 = inlined_call_operand.hbm [shape: f32[8,48], index: 24, kind: output, shape index: {}]  }
   0x1   :  { %3127 = sst [smem:[#allocation6_spill]] %s3101_s0 }
   0x2   :  { %3128 = sst [smem:[#allocation7_spill]] %s3102_s1 }
   0x3   :  { %3129 = sst [smem:[#allocation8_spill]] %s3103_s2 }
   0x4   :  { %3130 = sst [smem:[#allocation9_spill]] %s3104_s3 }
   0x5   :  { %3131 = sst [smem:[#allocation10_spill]] %s3105_s4 }
   0x6   :  { %3132 = sst [smem:[#allocation11_spill]] %s3106_s5 }
   0x7   :  { %3133 = sst [smem:[#allocation12_spill]] %s3107_s6 }
   0x8   :  { %3134 = sst [smem:[#allocation13_spill]] %s3108_s7 }
   0x9   :  { %3135 = sst [smem:[#allocation14_spill]] %s3109_s8 }
   0xa   :  { %s3136_s27 = sld [smem:[#allocation11_spill]]  ;;  %v2520_v1 = vmov 0.0   ;;  %s3137_s2 = sld [smem:[#allocation9_spill]]  ;;  %vm103_vm0 = vcmask 1045504   ;;  %vm163_vm1 = vcmask 130048   ;;  %vm99_vm2 = vcmask 97280  }
   0xb   :  { %2275 = vmatprep.subr.bf16.mxu1 %v2520_v1  ;;  %276 = vst [vmem:[#allocation2] sm:$0xff] %v2520_v1  ;;  %277 = vst [vmem:[#allocation2 + $0x8] sm:$0xff] %v2520_v1  ;;  %2269 = vmatprep.subr.bf16.mxu0 %v2520_v1  ;;  %s3138_s7 = sld [smem:[#allocation8_spill]]  ;;  %s3139_s25 = sld [smem:[#allocation7_spill]]  ;;  %vm2521_vm3 = vmmov 0   ;;  %vm231_vm4 = vcmask 1043456  }
   0xc   :  { %278 = vst [vmem:[#allocation2 + $0x10] sm:$0xff] %v2520_v1  ;;  %2277 = vmatprep.mubr.msk.bf16.mxu1 %vm2521_vm3, %v2520_v1  ;;  %2271 = vmatprep.mubr.msk.bf16.mxu0 %vm2521_vm3, %v2520_v1  ;;  %s3140_s1 = sld [smem:[#allocation13_spill]]  ;;  %v2404_v9 = vld [vmem:[%s3110_s9] sm:$0x3f]   ;;  %vm227_vm5 = vcmask 195584  }
   0xd   :  { %v301_v11 = vsel %vm103_vm0, %v2404_v9, 0  ;;  %v2407_v14 = vld [vmem:[%s3112_s11] sm:$0xff]  }
  0x10   :  { %v2402_v0 = vld [vmem:[%s3136_s27] sm:$0xff]  }
  0x11   :  { %v2403_v2 = vld [vmem:[%s3137_s2] sm:$0x3f]   ;;  %2276 = vmatpush3.bf16.msra.mxu1 %v2402_v0  ;;  %s3141_s2 = sld [smem:[#allocation6_spill]] }
  0x12   :  { %v83_v3 = vld [vmem:[%s3138_s7] sm:$0xff]  ;;  %v105_v5 = vsel %vm103_vm0, %v2403_v2, 0  ;;  %2289 = vmatprep.subr.bf16.mxu1 %v2520_v1  ;;  %v2406_v10 = vld [vmem:[%s3140_s1 + $0x8] ss:$0 sps:$4 sm:$0xff]  }
  0x13   :  { %v81_v4 = vld [vmem:[%s3139_s25] sm:$0xff]  ;;  %v84_v6 = vpack.c.bf16 %v83_v3, %v83_v3  ;;  %2270 = vmatpush3.bf16.msra.mxu0 %v105_v5  ;;  %v233_v12 = vsel %vm231_vm4, %v2406_v10, 0 }
  0x14   :  { %v82_v7 = vpack.c.bf16 %v81_v4, %v81_v4  ;;  %v2405_v8 = vld [vmem:[%s3140_s1] sm:$0xff]   ;;  %2281 = vmatprep.subr.bf16.mxu0 %v2520_v1 }
  0x15   :  { %2278 = vmatmul.mubr.msk.bf16.vlgmr.msra.gmra.mrb[0].mxu1 %vm163_vm1, %v84_v6 }
  0x16   :  { %2291 = vmatprep.mubr.msk.bf16.mxu1 %vm2521_vm3, %v2520_v1  ;;  %2272 = vmatmul.mubr.msk.bf16.vlgmr.msra.gmra.mrb[0].mxu0 %vm99_vm2, %v82_v7 }
  0x17   :  { %2290 = vmatpush3.bf16.msra.mxu1 %v301_v11  ;;  %v79_v13 = vld [vmem:[%s3141_s2] sm:$0xff]  ;;  %2282 = vmatpush3.bf16.msra.mxu0 %v2405_v8 }
  0x18   :  { %2285 = vmatprep.mubr.msk.bf16.mxu0 %vm2521_vm3, %v2520_v1  ;;  %2283 = vmatprep.subr.bf16.mxu0 %v2520_v1  ;;  %v2696_v15 = vpack.c.bf16 %v79_v13, %v79_v13 }
  0x1b   :  { %2284 = vmatpush3.bf16.msra.mxu0 %v233_v12 }
  0x1c   :  { %2295 = vmatprep.subr.bf16.mxu0 %v2520_v1 }
  0x1d   :  { %2292 = vmatmul.mubr.msk.bf16.vlgmr.msra.gmra.mrb[4].mxu1 %vm99_vm2, %v82_v7 }
  0x1e   :  { %499 = vmatprep.mubr.f32.mxu1 %v2520_v1  ;;  %2286 = vmatmul.mubr.msk.bf16.vlgmr.msra.gmra.mrb[4].mxu0 %vm227_vm5, %v2696_v15 }
  0x1f   :  { %2296 = vmatpush3.bf16.msra.mxu0 %v2407_v14  ;;  %2297 = vmatprep.mubr.msk.bf16.mxu0 %vm2521_vm3, %v2520_v1 }
  0x26   :  { %2298 = vmatmul.mubr.msk.bf16.vlgmr.msra.gmra.mrb[8].mxu0 %vm163_vm1, %v84_v6 }
  0x27   :  { %654 = vmatprep.mubr.f32.mxu0 %v2520_v1 }
  0x28   :  { %29 = vsyncpa [#allocation4], 0  ;;  %s3142_s30 = sld [smem:[#allocation12_spill]]  ;;  %s3143_s8 = sld [smem:[#allocation10_spill]]  ;;  %vm279_vm6 = vcmask 523264   ;;  %vm343_vm7 = vcmask 31744  }
  0x29   :  { %v2047_v30 = vld [vmem:[%s3111_s10] ss:$0 sm:$0xff]  ;;  %s3144_s27 = sld [smem:[#allocation14_spill]]  ;;  %v422_v6 = vld [vmem:[%s3116_s15 + $0x8] sm:$0xf]  ;;  %vm1499_vm8 = vcmask 48128  }
  0x2a   :  { %v2050_v44 = vld [vmem:[%s3113_s12] ss:$0 sm:$0xff]  ;;  %v577_v7 = vld [vmem:[%s3117_s16 + $0x8] sm:$0xf]  ;;  %vm2021_vm9 = vcmask 392192  }
  0x2b   :  { %v421_v61 = vld [vmem:[%s3116_s15] sm:$0xff]  ;;  %v2413_v13 = vld [vmem:[%s3119_s18 + $0x48] sm:$0xff]  }
  0x2c   :  { %v425_v62 = vcombine.high %v421_v61, %v421_v61  ;;  %v576_v63 = vld [vmem:[%s3117_s16] sm:$0xff] }
  0x2d   :  { %v580_v0 = vcombine.high %v576_v63, %v576_v63  ;;  %v2410_v8 = vld [vmem:[%s3119_s18 + $0x40] sm:$0xff]  }
  0x2e   :  { %v2040_v16 = vld [vmem:[%s3142_s30] ss:$0 sm:$0xff]  ;;  %2053 = vmatprep.subr.msk.mxu1 %vm231_vm4, %v425_v62  ;;  %v2443_v62 = vld [vmem:[%s3121_s20 + $0x58] sm:$0xff]  }
  0x2f   :  { %v2037_v18 = vld [vmem:[%s3143_s8] ss:$0 sm:$0xff]  ;;  %2054 = vmatpush1.msk.msra.mxu1 %vm231_vm4, %v421_v61  ;;  %2058 = vmatprep.subr.msk.mxu0 %vm231_vm4, %v580_v0  ;;  %v2441_v61 = vld [vmem:[%s3121_s20 + $0x10] sm:$0xff]  }
  0x30   :  { %v2043_v32 = vld [vmem:[%s3144_s27] ss:$0 sm:$0xff]  ;;  %2301 = vmatprep.subr.mxu1 %v2520_v1  ;;  %2059 = vmatpush1.msk.msra.mxu0 %vm231_vm4, %v576_v63 }
  0x31   :  { %2311 = vmatprep.subr.mxu0 %v2520_v1  ;;  %v785_v11 = vld [vmem:[%s3120_s19] sm:$0xf] }
  0x32   :  { %v2411_v12 = vld [vmem:[%s3119_s18] sm:$0xff]  }
  0x33   :  { %v2412_v14 = vld [vmem:[%s3119_s18 + $0x80] sm:$0xff]  }
  0xe8   :  { %v201_v17 = vpop.f32.mrb[0].mxu1 }
  0xe9   :  { %v202_v19 = vadd.f32 %v2040_v16, %v201_v17  ;;  %v2279_v20 = vpop.f32.mrb[1].mxu1  ;;  %v141_v22 = vpop.f32.mrb[0].mxu0  ;;  %v2414_v16 = vld [vmem:[%s3119_s18 + $0x8] sm:$0xff]   ;;  %v2416_v17 = vld [vmem:[%s3119_s18 + $0x50] sm:$0xff]  }
  0xea   :  { %v204_v21 = vpop.f32.mrb[2].mxu1  ;;  %v142_v25 = vadd.f32 %v2037_v18, %v141_v22  ;;  %v2273_v26 = vpop.f32.mrb[1].mxu0  ;;  %v2415_v18 = vld [vmem:[%s3119_s18 + $0x88] sm:$0xff]   ;;  %v2419_v20 = vld [vmem:[%s3119_s18 + $0x58] sm:$0xff]  }
  0xeb   :  { %v207_v23 = vmax.f32 %v202_v19, 0.0  ;;  %v2280_v24 = vpop.f32.mrb[3].mxu1  ;;  %v144_v27 = vpop.f32.mrb[2].mxu0  ;;  %v2417_v19 = vld [vmem:[%s3119_s18 + $0x10] sm:$0xff]   ;;  %v2420_v22 = vld [vmem:[%s3119_s18 + $0x18] sm:$0xff]   ;;  %v2425_v26 = vld [vmem:[%s3119_s18 + $0x68] sm:$0xff]  }
  0xec   :  { %v147_v28 = vmax.f32 %v142_v25, 0.0  ;;  %v2274_v29 = vpop.f32.mrb[3].mxu0  ;;  %v2418_v21 = vld [vmem:[%s3119_s18 + $0x90] sm:$0xff]   ;;  %v2421_v24 = vld [vmem:[%s3119_s18 + $0x98] sm:$0xff]   ;;  %v2423_v25 = vld [vmem:[%s3119_s18 + $0x20] sm:$0xff]  }
  0xed   :  { %281 = vst.msk [vmem:[#allocation2 + $0x8] sm:$0xff] %vm279_vm6, %v207_v23  ;;  %v2422_v23 = vld [vmem:[%s3119_s18 + $0x60] sm:$0xff]   ;;  %v2428_v29 = vld [vmem:[%s3119_s18 + $0x70] sm:$0xff]  }
  0xee   :  { %280 = vst.msk [vmem:[#allocation2] sm:$0xff] %vm279_vm6, %v147_v28  ;;  %v2424_v27 = vld [vmem:[%s3119_s18 + $0xa0] sm:$0xff]   ;;  %v2426_v28 = vld [vmem:[%s3119_s18 + $0x28] sm:$0xff]  }
  0xf0   :  { %v337_v31 = vpop.f32.mrb[4].mxu1 }
  0xf1   :  { %v338_v33 = vadd.f32 %v2047_v30, %v337_v31  ;;  %v2293_v34 = vpop.f32.mrb[5].mxu1  ;;  %v269_v36 = vpop.f32.mrb[4].mxu0  ;;  %v2427_v30 = vld [vmem:[%s3119_s18 + $0xa8] sm:$0xff]   ;;  %v2429_v31 = vld [vmem:[%s3119_s18 + $0x30] sm:$0xff]  }
  0xf2   :  { %v340_v35 = vpop.f32.mrb[6].mxu1  ;;  %v270_v39 = vadd.f32 %v2043_v32, %v269_v36  ;;  %v2287_v40 = vpop.f32.mrb[5].mxu0  ;;  %v2430_v32 = vld [vmem:[%s3119_s18 + $0xb0] sm:$0xff]   ;;  %v2432_v34 = vld [vmem:[%s3119_s18 + $0x38] sm:$0xff]   ;;  %v2434_v36 = vld [vmem:[%s3121_s20 + $0x40] sm:$0xff]  }
  0xf3   :  { %v2294_v37 = vpop.f32.mrb[7].mxu1  ;;  %v344_v38 = vsel %vm343_vm7, %v338_v33, -inf  ;;  %v272_v41 = vpop.f32.mrb[6].mxu0  ;;  %v2433_v35 = vld [vmem:[%s3119_s18 + $0xb8] sm:$0xff]  }
  0xf4   :  { %345 = vmax.xlane.f32.xlu0 %v344_v38  ;;  %v275_v42 = vmax.f32 %v270_v39, 0.0  ;;  %v2288_v43 = vpop.f32.mrb[7].mxu0  ;;  %v2858_v40 = vld [vmem:[#allocation2 + $0x8] sm:$0xff] }
  0xf5   :  { %v2855_v37 = vld [vmem:[#allocation2] sm:$0xff] }
  0xf6   :  { %282 = vst.msk [vmem:[#allocation2 + $0x10] sm:$0xff] %vm279_vm6, %v275_v42 }
  0xf9   :  { %v404_v45 = vpop.f32.mrb[8].mxu0 }
  0xfa   :  { %v405_v46 = vadd.f32 %v2050_v44, %v404_v45  ;;  %v2299_v47 = vpop.f32.mrb[9].mxu0 }
  0xfb   :  { %v407_v48 = vpop.f32.mrb[10].mxu0 }
  0xfc   :  { %v410_v49 = vsel %vm343_vm7, %v405_v46, -inf  ;;  %v2300_v50 = vpop.f32.mrb[11].mxu0 }
  0xfd   :  { %411 = vmax.xlane.f32.xlu0 %v410_v49  ;;  %v2861_v44 = vld [vmem:[#allocation2 + $0x10] sm:$0xff]  ;;  %v2437_v50 = vld [vmem:[%s3121_s20 + $0x48] sm:$0xff]  }
 0x181   :  { %v346_v51 = vpop.xlane.xlu0 %345 }
 0x182   :  { %v347_v52 = vsub.f32 %v338_v33, %v346_v51  ;;  %v2431_v33 = vld [vmem:[%s3119_s18 + $0x78] sm:$0xff]   ;;  %v2436_v51 = vld [vmem:[%s3121_s20 + $0x80] sm:$0xff]  }
 0x184   :  { %v348_v53 = vmul.f32 1.442695, %v347_v52 }
 0x186   :  { %2484 = vpow2.f32 %v348_v53  ;;  %v2438_v53 = vld [vmem:[%s3121_s20 + $0x8] sm:$0xff]  }
 0x18a   :  { %v412_v54 = vpop.xlane.xlu0 %411 }
 0x18b   :  { %v413_v55 = vsub.f32 %v405_v46, %v412_v54  ;;  %v2435_v46 = vld [vmem:[%s3121_s20] sm:$0xff]   ;;  %v2440_v54 = vld [vmem:[%s3121_s20 + $0x50] sm:$0xff]  }
 0x18d   :  { %v414_v56 = vmul.f32 1.442695, %v413_v55 }
 0x18f   :  { %2486 = vpow2.f32 %v414_v56 }
 0x190   :  { %v2485_v57 = vpop.eup %2484 }
 0x191   :  { %v350_v58 = vsel %vm343_vm7, %v2485_v57, 0.0 }
 0x192   :  { %351 = vadd.xlane.f32.xlu1 %v350_v58 }
 0x199   :  { %v2487_v59 = vpop.eup %2486 }
 0x19a   :  { %v416_v60 = vsel %vm343_vm7, %v2487_v59, 0.0 }
 0x19b   :  { %417 = vadd.xlane.f32.xlu1 %v416_v60 }
 0x21f   :  { %v352_v2 = vpop.xlane.xlu1 %351 }
 0x220   :  { %2488 = vrcp.f32 %v352_v2  ;;  %v2442_v2 = vld [vmem:[%s3121_s20 + $0x90] sm:$0xff]  }
 0x228   :  { %v418_v3 = vpop.xlane.xlu1 %417 }
 0x229   :  { %2490 = vrcp.f32 %v418_v3 }
 0x22a   :  { %v2489_v4 = vpop.eup %2488 }
 0x22b   :  { %v354_v5 = vmul.f32 %v2489_v4, %v2485_v57  ;;  %v2439_v57 = vld [vmem:[%s3121_s20 + $0x88] sm:$0xff]   ;;  %v2444_v4 = vld [vmem:[%s3121_s20 + $0x18] sm:$0xff]  }
 0x22d   :  { %2055 = vmatmul.mubr.msk.f32.vlgmr.msra.gmra.mrb[8].mxu1 %vm343_vm7, %v354_v5 }
 0x22e   :  { %2302 = vmatpush3.msk.msra.mxu1 %vm231_vm4, %v422_v6  ;;  %2303 = vmatprep.mubr.msk.f32.mxu1 %vm2521_vm3, %v2520_v1  ;;  %v2445_v6 = vld [vmem:[%s3121_s20 + $0x98] sm:$0xff]  }
 0x22f   :  { %2306 = vmatprep.subr.mxu1 %v2520_v1 }
 0x231   :  { %2304 = vmatmul.mubr.msk.f32.vlgmr.msra.gmra.mrb[10].mxu1 %vm343_vm7, %v354_v5 }
 0x232   :  { %2307 = vmatpush3.msk.msra.mxu1 %vm231_vm4, %v577_v7  ;;  %2308 = vmatprep.mubr.msk.f32.mxu1 %vm2521_vm3, %v2520_v1  ;;  %v2447_v7 = vld [vmem:[%s3121_s20 + $0x20] sm:$0xff]  }
 0x233   :  { %2167 = vmatprep.subr.bf16.mxu1 %v2410_v8  ;;  %v2491_v9 = vpop.eup %2490  ;;  %v2449_v8 = vld [vmem:[%s3121_s20 + $0x68] sm:$0xff]  }
 0x234   :  { %v2759_v10 = vmul.f32 %v2491_v9, %v2487_v59  ;;  %v2448_v9 = vld [vmem:[%s3121_s20 + $0xa0] sm:$0xff]  }
 0x236   :  { %2060 = vmatmul.mubr.msk.f32.vlgmr.msra.gmra.mrb[12].mxu0 %vm343_vm7, %v2759_v10  ;;  %2309 = vmatmul.mubr.msk.f32.vlgmr.msra.gmra.mrb[12].mxu1 %vm343_vm7, %v2759_v10 }
 0x237   :  { %2312 = vmatpush3.msk.msra.mxu0 %vm231_vm4, %v785_v11  ;;  %2313 = vmatprep.mubr.msk.f32.mxu0 %vm2521_vm3, %v2520_v1  ;;  %v2450_v11 = vld [vmem:[%s3121_s20 + $0x28] sm:$0xff]  }
 0x238   :  { %2168 = vmatpush3.bf16.msra.mxu1 %v2411_v12  ;;  %2316 = vmatprep.subr.bf16.mxu0 %v2520_v1  ;;  %v2452_v12 = vld [vmem:[%s3121_s20 + $0x70] sm:$0xff]  }
 0x239   :  { %2169 = vmatprep.subr.bf16.mxu1 %v2413_v13  ;;  %v2451_v13 = vld [vmem:[%s3121_s20 + $0xa8] sm:$0xff]  }
 0x23a   :  { %2314 = vmatmul.mubr.msk.f32.vlgmr.msra.gmra.mrb[14].mxu0 %vm343_vm7, %v354_v5  ;;  %v2446_v5 = vld [vmem:[%s3121_s20 + $0x60] sm:$0xff]  }
 0x23b   :  { %2317 = vmatpush3.bf16.msra.mxu0 %v2412_v14  ;;  %2332 = vmatprep.mubr.msk.bf16.mxu0 %vm2521_vm3, %v2520_v1  ;;  %v2453_v14 = vld [vmem:[%s3121_s20 + $0x30] sm:$0xff]  }
 0x23c   :  { %2170 = vmatpush3.bf16.msra.mxu1 %v2414_v16  ;;  %2318 = vmatprep.subr.bf16.mxu0 %v2520_v1  ;;  %v2455_v16 = vld [vmem:[%s3121_s20 + $0x78] sm:$0xff]  }
 0x23d   :  { %2171 = vmatprep.subr.bf16.mxu1 %v2416_v17  ;;  %v2454_v17 = vld [vmem:[%s3121_s20 + $0xb0] sm:$0xff]  }
 0x23f   :  { %2319 = vmatpush3.bf16.msra.mxu0 %v2415_v18  ;;  %v2456_v18 = vld [vmem:[%s3121_s20 + $0x38] sm:$0xff]  }
 0x240   :  { %2172 = vmatpush3.bf16.msra.mxu1 %v2417_v19  ;;  %2320 = vmatprep.subr.bf16.mxu0 %v2520_v1 }
 0x241   :  { %2173 = vmatprep.subr.bf16.mxu1 %v2419_v20  ;;  %v2457_v20 = vld [vmem:[%s3121_s20 + $0xb8] sm:$0xff]  }
 0x243   :  { %2321 = vmatpush3.bf16.msra.mxu0 %v2418_v21 }
 0x244   :  { %2174 = vmatpush3.bf16.msra.mxu1 %v2420_v22  ;;  %2322 = vmatprep.subr.bf16.mxu0 %v2520_v1 }
 0x245   :  { %2175 = vmatprep.subr.bf16.mxu1 %v2422_v23  ;;  %v1362_v23 = vld [vmem:[%s3122_s21] sm:$0xf] }
 0x247   :  { %2323 = vmatpush3.bf16.msra.mxu0 %v2421_v24  ;;  %v2458_v24 = vld [vmem:[%s3114_s13] sm:$0xff]  }
 0x248   :  { %2176 = vmatpush3.bf16.msra.mxu1 %v2423_v25  ;;  %2324 = vmatprep.subr.bf16.mxu0 %v2520_v1 }
 0x249   :  { %2177 = vmatprep.subr.bf16.mxu1 %v2425_v26  ;;  %v2459_v26 = vld [vmem:[%s3114_s13 + $0x8] ss:$0 sps:$4 sm:$0xff]  }
 0x24b   :  { %2325 = vmatpush3.bf16.msra.mxu0 %v2424_v27  ;;  %v1457_v27 = vsel %vm231_vm4, %v2459_v26, 0  ;;  %v2468_v26 = vld [vmem:[%s3123_s22 + $0x90] sm:$0xff]  }
 0x24c   :  { %2178 = vmatpush3.bf16.msra.mxu1 %v2426_v28  ;;  %2326 = vmatprep.subr.bf16.mxu0 %v2520_v1 }
 0x24d   :  { %2179 = vmatprep.subr.bf16.mxu1 %v2428_v29 }
 0x24f   :  { %2327 = vmatpush3.bf16.msra.mxu0 %v2427_v30 }
 0x250   :  { %2180 = vmatpush3.bf16.msra.mxu1 %v2429_v31  ;;  %2328 = vmatprep.subr.bf16.mxu0 %v2520_v1 }
 0x251   :  { %2181 = vmatprep.subr.bf16.mxu1 %v2431_v33 }
 0x253   :  { %2329 = vmatpush3.bf16.msra.mxu0 %v2430_v32 }
 0x254   :  { %2330 = vmatprep.subr.bf16.mxu0 %v2520_v1  ;;  %2182 = vmatpush3.bf16.msra.mxu1 %v2432_v34 }
 0x255   :  { %2198 = vmatprep.subr.bf16.mxu1 %v2434_v36 }
 0x257   :  { %2331 = vmatpush3.bf16.msra.mxu0 %v2433_v35 }
 0x258   :  { %2336 = vmatprep.subr.bf16.mxu0 %v2520_v1 }
 0x300   :  { %v501_v38 = vpop.f32.mrb[8].mxu1 }
 0x301   :  { %v731_v39 = vmul.f32 %v501_v38, %v2855_v37  ;;  %v503_v41 = vpop.f32.mrb[9].mxu1 }
 0x302   :  { %v732_v42 = vmul.f32 %v503_v41, %v2858_v40 }
 0x303   :  { %v734_v47 = vpack.c.bf16 %v731_v39, %v731_v39 }
 0x304   :  { %v735_v43 = vpack.c.bf16 %v732_v42, %v732_v42  ;;  %v572_v45 = vpop.f32.mrb[10].mxu1 }
 0x305   :  { %v733_v48 = vmul.f32 %v572_v45, %v2861_v44  ;;  %v2305_v49 = vpop.f32.mrb[11].mxu1 }
 0x306   :  { %1035 = vmatprep.mubr.bf16.mxu1 %v735_v43 }
 0x307   :  { %v736_v52 = vpack.c.bf16 %v733_v48, %v733_v48  ;;  %1036 = vmatmul.mubr.bf16.vlgmr.msra.gmra.mrb[16].mxu1 %v734_v47 }
 0x308   :  { %2199 = vmatpush3.bf16.msra.mxu1 %v2435_v46 }
 0x309   :  { %2333 = vmatmul.mubr.bf16.vlgmr.msra.gmra.mrb[16].mxu0 %v736_v52  ;;  %2200 = vmatprep.subr.bf16.mxu1 %v2437_v50  ;;  %v656_v55 = vpop.f32.mrb[12].mxu0  ;;  %v727_v56 = vpop.f32.mrb[12].mxu1  ;;  %v2115_v52 = vld [vmem:[%s3115_s14] ss:$0 sm:$0xff] }
 0x30a   :  { %2337 = vmatpush3.bf16.msra.mxu0 %v2436_v51  ;;  %2352 = vmatprep.mubr.msk.bf16.mxu0 %vm2521_vm3, %v2520_v1  ;;  %v658_v58 = vpop.f32.mrb[13].mxu0  ;;  %v2310_v59 = vpop.f32.mrb[13].mxu1  ;;  %v1083_v19 = vmul.f32 %v656_v55, %v2855_v37  ;;  %v1085_v21 = vmul.f32 %v727_v56, %v2861_v44 }
 0x30b   :  { %2338 = vmatprep.subr.bf16.mxu0 %v2520_v1  ;;  %v1084_v60 = vmul.f32 %v658_v58, %v2858_v40 }
 0x30c   :  { %2201 = vmatpush3.bf16.msra.mxu1 %v2438_v53  ;;  %v1086_v22 = vpack.c.bf16 %v1083_v19, %v1083_v19  ;;  %v1088_v25 = vpack.c.bf16 %v1085_v21, %v1085_v21  ;;  %v2478_v19 = vld [vmem:[%s3123_s22 + $0x70] sm:$0xff]  }
 0x30d   :  { %2202 = vmatprep.subr.bf16.mxu1 %v2440_v54  ;;  %v1087_v63 = vpack.c.bf16 %v1084_v60, %v1084_v60  ;;  %v2892_v0 = vpop.f32.mrb[14].mxu0 }
 0x30e   :  { %2339 = vmatpush3.bf16.msra.mxu0 %v2439_v57  ;;  %v2315_v3 = vpop.f32.mrb[15].mxu0 }
 0x30f   :  { %2340 = vmatprep.subr.bf16.mxu0 %v2520_v1  ;;  %1313 = vmatprep.mubr.bf16.mxu1 %v1087_v63  ;;  %v1512_v3 = vld [vmem:[%s3118_s17 + $0x8] sm:$0x3f] }
 0x310   :  { %2203 = vmatpush3.bf16.msra.mxu1 %v2441_v61 }
 0x311   :  { %2204 = vmatprep.subr.bf16.mxu1 %v2443_v62 }
 0x312   :  { %2341 = vmatpush3.bf16.msra.mxu0 %v2442_v2 }
 0x313   :  { %2342 = vmatprep.subr.bf16.mxu0 %v2520_v1 }
 0x314   :  { %2205 = vmatpush3.bf16.msra.mxu1 %v2444_v4  ;;  %v1511_v4 = vld [vmem:[%s3118_s17] sm:$0x3f] }
 0x315   :  { %2206 = vmatprep.subr.bf16.mxu1 %v2446_v5  ;;  %v2460_v5 = vld [vmem:[%s3123_s22 + $0x40] sm:$0xff]  }
 0x316   :  { %2343 = vmatpush3.bf16.msra.mxu0 %v2445_v6  ;;  %v2461_v6 = vld [vmem:[%s3123_s22] sm:$0xff]  }
 0x317   :  { %2344 = vmatprep.subr.bf16.mxu0 %v2520_v1 }
 0x318   :  { %2207 = vmatpush3.bf16.msra.mxu1 %v2447_v7  ;;  %v2463_v7 = vld [vmem:[%s3123_s22 + $0x48] sm:$0xff]  }
 0x319   :  { %2208 = vmatprep.subr.bf16.mxu1 %v2449_v8  ;;  %v2464_v8 = vld [vmem:[%s3123_s22 + $0x8] sm:$0xff]  }
 0x31a   :  { %2345 = vmatpush3.bf16.msra.mxu0 %v2448_v9  ;;  %v2466_v9 = vld [vmem:[%s3123_s22 + $0x50] sm:$0xff]  }
 0x31b   :  { %2346 = vmatprep.subr.bf16.mxu0 %v2520_v1 }
 0x31c   :  { %2209 = vmatpush3.bf16.msra.mxu1 %v2450_v11  ;;  %v2467_v11 = vld [vmem:[%s3123_s22 + $0x10] sm:$0xff]  }
 0x31d   :  { %2210 = vmatprep.subr.bf16.mxu1 %v2452_v12  ;;  %v2469_v12 = vld [vmem:[%s3123_s22 + $0x58] sm:$0xff]  }
 0x31e   :  { %2347 = vmatpush3.bf16.msra.mxu0 %v2451_v13  ;;  %v2470_v13 = vld [vmem:[%s3123_s22 + $0x18] sm:$0xff]  }
 0x31f   :  { %2348 = vmatprep.subr.bf16.mxu0 %v2520_v1 }
 0x320   :  { %2211 = vmatpush3.bf16.msra.mxu1 %v2453_v14  ;;  %v2472_v14 = vld [vmem:[%s3123_s22 + $0x60] sm:$0xff]  }
 0x321   :  { %2212 = vmatprep.subr.bf16.mxu1 %v2455_v16  ;;  %v2473_v16 = vld [vmem:[%s3123_s22 + $0x20] sm:$0xff]  }
 0x322   :  { %2349 = vmatpush3.bf16.msra.mxu0 %v2454_v17  ;;  %v2475_v17 = vld [vmem:[%s3123_s22 + $0x68] sm:$0xff]  }
 0x323   :  { %2350 = vmatprep.subr.bf16.mxu0 %v2520_v1 }
 0x324   :  { %2213 = vmatpush3.bf16.msra.mxu1 %v2456_v18  ;;  %v2476_v18 = vld [vmem:[%s3123_s22 + $0x28] sm:$0xff]  }
 0x325   :  { %2356 = vmatprep.subr.mxu1 %v2520_v1 }
 0x326   :  { %2351 = vmatpush3.bf16.msra.mxu0 %v2457_v20 }
 0x327   :  { %1314 = vmatmul.mubr.bf16.vlgmr.msra.gmra.mrb[20].mxu1 %v1086_v22  ;;  %2361 = vmatprep.subr.bf16.mxu0 %v2520_v1 }
 0x328   :  { %2357 = vmatpush3.msk.msra.mxu1 %vm231_vm4, %v1362_v23  ;;  %2358 = vmatprep.mubr.msk.f32.mxu1 %vm2521_vm3, %v2520_v1  ;;  %v1513_v23 = vld [vmem:[%s3118_s17 + $0x10] sm:$0x3f] }
 0x329   :  { %2353 = vmatmul.mubr.bf16.vlgmr.msra.gmra.mrb[20].mxu0 %v1088_v25  ;;  %2119 = vmatprep.subr.msk.mxu1 %vm103_vm0, %v1512_v3  ;;  %v2465_v25 = vld [vmem:[%s3123_s22 + $0x88] sm:$0xff]  }
 0x32a   :  { %2362 = vmatpush3.bf16.msra.mxu0 %v2458_v24  ;;  %2365 = vmatprep.mubr.msk.bf16.mxu0 %vm2521_vm3, %v2520_v1  ;;  %v2462_v24 = vld [vmem:[%s3123_s22 + $0x80] sm:$0xff]  }
 0x32b   :  { %2363 = vmatprep.subr.bf16.mxu0 %v2520_v1 }
 0x32e   :  { %2364 = vmatpush3.bf16.msra.mxu0 %v1457_v27  ;;  %v2471_v27 = vld [vmem:[%s3123_s22 + $0x98] sm:$0xff]  }
 0x32f   :  { %2359 = vmatmul.mubr.msk.f32.vlgmr.msra.gmra.mrb[14].mxu1 %vm343_vm7, %v2759_v10  ;;  %2236 = vmatprep.subr.bf16.mxu0 %v2460_v5 }
 0x330   :  { %1590 = vmatprep.mubr.f32.mxu1 %v2520_v1  ;;  %2120 = vmatpush1.msk.msra.mxu1 %vm103_vm0, %v1511_v4 }
 0x331   :  { %2366 = vmatmul.mubr.msk.bf16.vlgmr.msra.gmra.mrb[24].mxu0 %vm227_vm5, %v2696_v15  ;;  %2369 = vmatprep.subr.mxu1 %v2520_v1 }
 0x332   :  { %2237 = vmatpush3.bf16.msra.mxu0 %v2461_v6 }
 0x333   :  { %2238 = vmatprep.subr.bf16.mxu0 %v2463_v7 }
 0x336   :  { %2239 = vmatpush3.bf16.msra.mxu0 %v2464_v8 }
 0x337   :  { %2240 = vmatprep.subr.bf16.mxu0 %v2466_v9 }
 0x33a   :  { %2241 = vmatpush3.bf16.msra.mxu0 %v2467_v11 }
 0x33b   :  { %2242 = vmatprep.subr.bf16.mxu0 %v2469_v12 }
 0x33e   :  { %2243 = vmatpush3.bf16.msra.mxu0 %v2470_v13 }
 0x33f   :  { %2244 = vmatprep.subr.bf16.mxu0 %v2472_v14 }
 0x342   :  { %2245 = vmatpush3.bf16.msra.mxu0 %v2473_v16 }
 0x343   :  { %2246 = vmatprep.subr.bf16.mxu0 %v2475_v17 }
 0x346   :  { %2247 = vmatpush3.bf16.msra.mxu0 %v2476_v18 }
 0x347   :  { %2248 = vmatprep.subr.bf16.mxu0 %v2478_v19 }
 0x3da   :  { %v2183_v28 = vpop.f32.mrb[16].mxu1 }
 0x3db   :  { %v2184_v29 = vpop.f32.mrb[17].mxu1 }
 0x3dc   :  { %v2185_v30 = vadd.f32 %v2184_v29, %v2183_v28  ;;  %v2186_v31 = vpop.f32.mrb[18].mxu1  ;;  %v1077_v32 = vpop.f32.mrb[16].mxu0  ;;  %v2474_v28 = vld [vmem:[%s3123_s22 + $0xa0] sm:$0xff]   ;;  %v2477_v29 = vld [vmem:[%s3123_s22 + $0xa8] sm:$0xff]  }
 0x3dd   :  { %v2187_v33 = vpop.f32.mrb[19].mxu1  ;;  %v2334_v34 = vpop.f32.mrb[17].mxu0  ;;  %v2480_v31 = vld [vmem:[%s3123_s22 + $0xb0] sm:$0xff]  }
 0x3de   :  { %v1038_v35 = vadd.f32 %v2185_v30, %v2892_v0  ;;  %v1080_v36 = vpop.f32.mrb[18].mxu0  ;;  %v2479_v30 = vld [vmem:[%s3123_s22 + $0x30] sm:$0xff]   ;;  %v2482_v33 = vld [vmem:[%s3123_s22 + $0x38] sm:$0xff]  }
 0x3df   :  { %v2335_v38 = vpop.f32.mrb[19].mxu0  ;;  %2249 = vmatpush3.bf16.msra.mxu0 %v2479_v30  ;;  %v2483_v34 = vld [vmem:[%s3123_s22 + $0xb8] sm:$0xff]  }
 0x3e0   :  { %v1078_v39 = vadd.f32 %v1077_v32, %v1038_v35  ;;  %v2481_v32 = vld [vmem:[%s3123_s22 + $0x78] sm:$0xff]   ;;  %s2522_s22 = smov [#allocation3]  }
 0x3e1   :  { %2250 = vmatprep.subr.bf16.mxu0 %v2481_v32 }
 0x3e3   :  { %2251 = vmatpush3.bf16.msra.mxu0 %v2482_v33 }
 0x3e4   :  { %2394 = vmatprep.subr.mxu0 %v2520_v1 }
 0x3fa   :  { %v2214_v41 = vpop.f32.mrb[20].mxu1 }
 0x3fb   :  { %v2215_v42 = vpop.f32.mrb[21].mxu1 }
 0x3fc   :  { %v2216_v10 = vadd.f32 %v2215_v42, %v2214_v41  ;;  %v2217_v43 = vpop.f32.mrb[22].mxu1  ;;  %v1355_v45 = vpop.f32.mrb[20].mxu0 }
 0x3fd   :  { %v2218_v46 = vpop.f32.mrb[23].mxu1  ;;  %v2354_v47 = vpop.f32.mrb[21].mxu0 }
 0x3fe   :  { %v1356_v15 = vadd.f32 %v2216_v10, %v1355_v45  ;;  %v1358_v48 = vpop.f32.mrb[22].mxu0  ;;  %v1946_v46 = vld [vmem:[%s3124_s23] sm:$0x3f]  ;;  %s2029_s23 = sshll.u32 %s2522_s22, 4  ;;  %s2030_s23 = int_to_ptr.vmem [resolvable:$true] %s2029_s23 }
 0x3ff   :  { %v2355_v49 = vpop.f32.mrb[23].mxu0  ;;  %s2496_s10 = scalar_lea.vmem %s2030_s23, 128  ;;  %p2501_p1 = scmp.lt.s32.totalorder %s2030_s23, %s2030_s23 }
 0x400   :  { %v1361_v50 = vadd.f32 %v1356_v15, %v1078_v39  ;;  %p2497_p0 = scmp.ne.s32.totalorder %s2030_s23, %s2496_s10  ;;  %p2502_p2 = scmp.lt.s32.totalorder %s2496_s10, %s2496_s10 }
 0x402   :  { %v1432_v51 = vpop.f32.mrb[14].mxu1  ;;  %p2503_p3 = por %p2502_p2, %p2501_p1 }
 0x403   :  { %v2974_v53 = vadd.f32 %v1432_v51, %v1361_v50  ;;  %v2360_v54 = vpop.f32.mrb[15].mxu1 }
 0x404   :  { %v1493_v55 = vpop.f32.mrb[24].mxu0  ;;  %p2504_p4 = pnand %p2503_p3, %p2497_p0 }
 0x405   :  { %v1494_v56 = vadd.f32 %v2115_v52, %v1493_v55  ;;  %v2367_v57 = vpop.f32.mrb[25].mxu0 }
 0x406   :  { %v1496_v58 = vpop.f32.mrb[26].mxu0 }
 0x407   :  { %v2368_v59 = vpop.f32.mrb[27].mxu0  ;;  %v1500_v60 = vsel %vm1499_vm8, %v1494_v56, -inf }
 0x408   :  { %1501 = vmax.xlane.f32.xlu0 %v1500_v60 }
 0x495   :  { %v1502_v61 = vpop.xlane.xlu0 %1501 }
 0x496   :  { %v1503_v62 = vsub.f32 %v1494_v56, %v1502_v61 }
 0x498   :  { %v1504_v63 = vmul.f32 1.442695, %v1503_v62 }
 0x49a   :  { %2492 = vpow2.f32 %v1504_v63 }
 0x4a4   :  { %v2493_v0 = vpop.eup %2492 }
 0x4a5   :  { %v1506_v2 = vsel %vm1499_vm8, %v2493_v0, 0.0 }
 0x4a6   :  { %1507 = vadd.xlane.f32.xlu1 %v1506_v2 }
 0x533   :  { %v1508_v20 = vpop.xlane.xlu1 %1507 }
 0x534   :  { %2494 = vrcp.f32 %v1508_v20 }
 0x53e   :  { %v2495_v21 = vpop.eup %2494 }
 0x53f   :  { %v1510_v22 = vmul.f32 %v2495_v21, %v2493_v0 }
 0x541   :  { %2121 = vmatmul.mubr.msk.f32.vlgmr.msra.gmra.mrb[24].mxu1 %vm1499_vm8, %v1510_v22 }
 0x542   :  { %2370 = vmatpush3.msk.msra.mxu1 %vm103_vm0, %v1513_v23  ;;  %2371 = vmatprep.mubr.msk.f32.mxu1 %vm2521_vm3, %v2520_v1 }
 0x543   :  { %2374 = vmatprep.subr.bf16.mxu1 %v2520_v1 }
 0x545   :  { %2372 = vmatmul.mubr.msk.f32.vlgmr.msra.gmra.mrb[26].mxu1 %vm1499_vm8, %v1510_v22 }
 0x546   :  { %2375 = vmatpush3.bf16.msra.mxu1 %v2462_v24  ;;  %2390 = vmatprep.mubr.msk.bf16.mxu1 %vm2521_vm3, %v2520_v1 }
 0x547   :  { %2376 = vmatprep.subr.bf16.mxu1 %v2520_v1 }
 0x54a   :  { %2377 = vmatpush3.bf16.msra.mxu1 %v2465_v25 }
 0x54b   :  { %2378 = vmatprep.subr.bf16.mxu1 %v2520_v1 }
 0x54e   :  { %2379 = vmatpush3.bf16.msra.mxu1 %v2468_v26 }
 0x54f   :  { %2380 = vmatprep.subr.bf16.mxu1 %v2520_v1 }
 0x552   :  { %2381 = vmatpush3.bf16.msra.mxu1 %v2471_v27 }
 0x553   :  { %2382 = vmatprep.subr.bf16.mxu1 %v2520_v1 }
 0x556   :  { %2383 = vmatpush3.bf16.msra.mxu1 %v2474_v28 }
 0x557   :  { %2384 = vmatprep.subr.bf16.mxu1 %v2520_v1 }
 0x55a   :  { %2385 = vmatpush3.bf16.msra.mxu1 %v2477_v29 }
 0x55b   :  { %2386 = vmatprep.subr.bf16.mxu1 %v2520_v1 }
 0x55e   :  { %2387 = vmatpush3.bf16.msra.mxu1 %v2480_v31 }
 0x55f   :  { %2388 = vmatprep.subr.bf16.mxu1 %v2520_v1 }
 0x562   :  { %2389 = vmatpush3.bf16.msra.mxu1 %v2483_v34 }
 0x614   :  { %v1592_v35 = vpop.f32.mrb[24].mxu1 }
 0x615   :  { %v1667_v36 = vmul.f32 %v1592_v35, %v2855_v37  ;;  %v1594_v38 = vpop.f32.mrb[25].mxu1 }
 0x616   :  { %v1668_v39 = vmul.f32 %v1594_v38, %v2858_v40 }
 0x617   :  { %v1670_v10 = vpack.c.bf16 %v1667_v36, %v1667_v36 }
 0x618   :  { %v1671_v41 = vpack.c.bf16 %v1668_v39, %v1668_v39  ;;  %v1663_v42 = vpop.f32.mrb[26].mxu1 }
 0x619   :  { %v1669_v43 = vmul.f32 %v1663_v42, %v2861_v44  ;;  %v2373_v45 = vpop.f32.mrb[27].mxu1 }
 0x61a   :  { %1897 = vmatprep.mubr.bf16.mxu0 %v1671_v41 }
 0x61b   :  { %v1672_v47 = vpack.c.bf16 %v1669_v43, %v1669_v43  ;;  %1898 = vmatmul.mubr.bf16.vlgmr.msra.gmra.mrb[28].mxu0 %v1670_v10 }
 0x61c   :  { %2395 = vmatpush3.msk.msra.mxu0 %vm103_vm0, %v1946_v46  ;;  %2396 = vmatprep.mubr.msk.f32.mxu0 %vm2521_vm3, %v2520_v1 }
 0x61d   :  { %2391 = vmatmul.mubr.bf16.vlgmr.msra.gmra.mrb[28].mxu1 %v1672_v47 }
 0x623   :  { %2397 = vmatmul.mubr.msk.f32.vlgmr.msra.gmra.mrb[32].mxu0 %vm1499_vm8, %v1510_v22 }
 0x6ee   :  { %v2252_v37 = vpop.f32.mrb[28].mxu0 }
 0x6ef   :  { %v2253_v40 = vpop.f32.mrb[29].mxu0 }
 0x6f0   :  { %v2254_v15 = vadd.f32 %v2253_v40, %v2252_v37  ;;  %v2255_v44 = vpop.f32.mrb[30].mxu0  ;;  %v1939_v48 = vpop.f32.mrb[28].mxu1 }
 0x6f1   :  { %v2256_v49 = vpop.f32.mrb[31].mxu0  ;;  %v2392_v50 = vpop.f32.mrb[29].mxu1 }
 0x6f2   :  { %v1940_v51 = vadd.f32 %v2254_v15, %v1939_v48  ;;  %v1942_v52 = vpop.f32.mrb[30].mxu1 }
 0x6f3   :  { %v2393_v54 = vpop.f32.mrb[31].mxu1 }
 0x6f4   :  { %v1945_v55 = vadd.f32 %v1940_v51, %v2974_v53 }
 0x6f6   :  { %v2016_v56 = vpop.f32.mrb[32].mxu0 }
 0x6f7   :  { %v2020_v1 = vadd.f32 %v2016_v56, %v1945_v55  ;;  %v2398_v57 = vpop.f32.mrb[33].mxu0 }
 0x6f9   :  { %2022 = vst.msk [vmem:[#allocation3] sm:$0xff] %vm2021_vm9, %v2020_v1 }
 0x6fa   :  { %2507 = shalt.err (!%p2504_p4)
}
 0x6fb   :  { %s2508_s9 = scalar_lea.hbm %s3125_s24, 128 }
 0x6fc   :  { %p2509_p5 = scmp.ne.s32.totalorder %s3125_s24, %s2508_s9  ;;  %p2512_p6 = scmp.lt.u32.totalorder %s2508_s9, %s3125_s24 }
 0x6fe   :  { %p2514_p7 = pnand %p2512_p6, %p2509_p5 }
 0x700   :  { %2517 = shalt.err (!%p2514_p7)
}
 0x701   :  { %2032 = dma.vmem_to_hbm [thread:$0]  %s2030_s23, 128, %s3125_s24, [#allocation4]  }
 0x702   :  { %2518 = dma.done.wait [#allocation4], 128  }
 0x703   :  { %2519 = vsyncadd [#allocation4], 4294967168 }
 0x704   :  { %2036 = vsyncpa [#allocation4], 1 }

</bundles_post_ra>
